<compile_context>
chip_gen: v6e
topology: v6e:2x2x1
jax: 0.10.0
libtpu: 0.0.40
codegen_flags: <defaults>
</compile_context>

<pallas_src>
import numpy as np
import jax
import jax.numpy as jnp
from jax import lax
from jax.experimental import pallas as pl
from jax.experimental.pallas import tpu as pltpu

SUBL = 8
LANES = 128


def make_bsa_kernel(filter_taps, NI, threshold, CHUNK, CHUNKS, T_pad, S):
    """Build the BSA kernel. All arguments are static Python values."""
    F = len(filter_taps)
    f = [float(v) for v in filter_taps]
    sum_f = float(np.asarray(filter_taps, np.float32).sum())
    thr = float(threshold)

    def kernel(sig_ref, out_ref):
        # Blocks are (T_pad, S, 128): time major, batch packed on (sublane, lane).

        # Initial window: raw rows 0..F-1 (no subtractions yet) + its running sum.
        win0 = tuple(sig_ref[k, :, :] for k in range(F))     # F x (S, 128)
        s0 = win0[0]
        for k in range(1, F):
            s0 = s0 + win0[k]

        def chunk_body(c, carry):
            s_sum, win = carry
            i0 = pl.multiple_of(c * CHUNK, CHUNK)
            # One aligned lookahead slab of raw signal rows i0+F .. i0+F+CHUNK-1.
            raw = sig_ref[pl.ds(i0 + F, CHUNK), :, :]         # (CHUNK, S, 128)
            masks = []
            for j in range(CHUNK):
                # err1 = |s_sum - sum(filter)| ; err2 = |s_sum| (O(1) per step).
                m = (jnp.abs(s_sum - sum_f)
                     <= jnp.abs(s_sum) * thr).astype(jnp.float32)   # (S, 128)
                masks.append(m)
                nxt = raw[j]                                   # raw data[i0+j+F]
                # Incremental window-sum update (the only serial chain).
                s_sum = s_sum - win[0] + nxt - m * sum_f
                # Slide the window; apply data[mask, i+1:i+F+1] -= filter.
                win = tuple((win[r + 1] if r + 1 < F else nxt) - f[r] * m
                            for r in range(F))
            # One unmasked full-vreg store per chunk.
            out_ref[pl.ds(i0, CHUNK), :, :] = jnp.stack(masks, axis=0)
            return (s_sum, win)

        lax.fori_loop(0, CHUNKS, chunk_body, (s0, win0))

        # Valid spikes live only in rows [0, NI); zero the tail (this also
        # overwrites the overrun rows [NI, CHUNKS*CHUNK) written by the loop).
        out_ref[pl.ds(NI, T_pad - NI), :, :] = jnp.zeros(
            (T_pad - NI, S, LANES), jnp.float32)

    return kernel


def bsa_forward(sig, filt, new_amp=1.0, threshold=0.9952, lane_groups=2, chunk=8):
    """JAX/Pallas equivalent of BSA.forward. Returns (B, T) 0/1 float32."""
    sig = jnp.asarray(sig, jnp.float32)
    filt_np = np.asarray(filt, np.float32) * np.float32(new_amp)
    B, T = sig.shape
    F = int(filt_np.shape[0])
    NI = T - F                      # reference loop runs i = 0 .. T-F-1
    if NI <= 0:
        return jnp.zeros((B, T), jnp.float32)

    # Each kernel block handles S*128 batch elements, S = 8*G sublanes.  G > 1
    # only when the batch is big enough to fill the extra vregs.
    per_group = SUBL * LANES                         # 1024 batch elems / group
    G = max(1, min(int(lane_groups), -(-B // per_group)))
    S = SUBL * G
    NB = -(-B // (S * LANES))                        # grid size (batch blocks)
    B_pad = NB * S * LANES

    CHUNK = int(chunk)
    CHUNKS = -(-NI // CHUNK)
    # Loop overruns to CHUNKS*CHUNK steps; its raw lookahead reads need rows up
    # to CHUNKS*CHUNK + F - 1 (zero padded, results discarded by the tail zero).
    T_pad = max(T, CHUNKS * CHUNK + F)

    # (B, T) -> (T_pad, NB*S, 128): single pad + transpose + reshape.
    sig_p = jnp.pad(sig, ((0, B_pad - B), (0, T_pad - T))).T
    sig_p = sig_p.reshape(T_pad, NB * S, LANES)

    kernel = make_bsa_kernel(filt_np.tolist(), NI, float(threshold),
                             CHUNK, CHUNKS, T_pad, S)

    # in + out blocks, double buffered, f32.
    vmem_need = 2 * 2 * T_pad * S * LANES * 4
    out_p = pl.pallas_call(
        kernel,
        out_shape=jax.ShapeDtypeStruct((T_pad, NB * S, LANES), jnp.float32),
        grid_spec=pltpu.PrefetchScalarGridSpec(
            num_scalar_prefetch=0,
            grid=(NB,),
            in_specs=[pl.BlockSpec((T_pad, S, LANES), lambda n: (0, n, 0))],
            out_specs=pl.BlockSpec((T_pad, S, LANES), lambda n: (0, n, 0)),
        ),
        compiler_params=pltpu.CompilerParams(
            dimension_semantics=("parallel",),
            vmem_limit_bytes=int(min(max(vmem_need + (2 << 20), 16 << 20),
                                     64 << 20)),
        ),
    )(sig_p)

    out = out_p.reshape(T_pad, B_pad).T
    return out[:B, :T]


def bsa_ref_numpy(sig, filt, threshold):
    """Direct NumPy port of the PyTorch bsa_encode for verification."""
    data = np.array(sig, dtype=np.float32)
    filt = np.asarray(filt, np.float32)
    B, T = data.shape
    F = filt.shape[0]
    out = np.zeros((B, T), np.float32)
    for i in range(T - F + 1):
        if i > T - F - 1:
            break
        err1 = np.abs((data[:, i:i + F] - filt).sum(1))
        err2 = np.abs(data[:, i:i + F].sum(1))
        mask = err1 <= err2 * threshold
        if np.any(mask):
            out[mask, i] = 1.0
            data[mask, i + 1:i + F + 1] -= filt
    return out


if __name__ == "__main__":
    key = jax.random.PRNGKey(0)
    B, T = 8, 32
    new_amp = 1.0
    threshold = 0.9952

    # deterministic module "parameter": a small smoothing filter (__init__ arg)
    filt = jnp.array([0.1, 0.3, 0.6, 0.3, 0.1], dtype=jnp.float32)

    # positive-ish analog signal, as BSA expects
    sig = jnp.abs(jax.random.normal(key, (B, T), dtype=jnp.float32))

    out = bsa_forward(sig, filt, new_amp=new_amp, threshold=threshold)
    out = jax.block_until_ready(out)

    ref = bsa_ref_numpy(np.asarray(sig),
                        np.asarray(filt, np.float32) * np.float32(new_amp),
                        threshold)
    assert out.shape == (B, T)
    assert np.array_equal(np.asarray(out), ref), "Pallas BSA output mismatch vs reference"

    # num_spike / count_spike is a trivial reduction over the output (glue).
    _num_spike = jnp.sum(out, axis=1)

    print("KERNEL_OK")
</pallas_src>

<mosaic_0001>
module attributes {stable_mosaic.version = 11 : i64} {
  func.func @kernel(%arg0: i32, %arg1: memref<37x8x128xf32, #tpu.memory_space<vmem>>, %arg2: memref<37x8x128xf32, #tpu.memory_space<vmem>>) attributes {dimension_semantics = [#tpu.dimension_semantics<parallel>], iteration_bounds = array<i64: 1>, scalar_prefetch = 0 : i64, scratch_operands = 0 : i64, tpu.core_type = #tpu.core_type<tc>, window_params = [{transform_indices = @transform_0, window_bounds = array<i64: 37, 8, 128>}, {transform_indices = @transform_1, window_bounds = array<i64: 37, 8, 128>}]} {
    %c0 = arith.constant 0 : index
    %c0_0 = arith.constant 0 : index
    %c0_1 = arith.constant 0 : index
    %0 = vector.load %arg1[%c0, %c0_0, %c0_1] : memref<37x8x128xf32, #tpu.memory_space<vmem>>, vector<1x8x128xf32>
    %1 = vector.shape_cast %0 : vector<1x8x128xf32> to vector<8x128xf32>
    %c1 = arith.constant 1 : index
    %c0_2 = arith.constant 0 : index
    %c0_3 = arith.constant 0 : index
    %2 = vector.load %arg1[%c1, %c0_2, %c0_3] : memref<37x8x128xf32, #tpu.memory_space<vmem>>, vector<1x8x128xf32>
    %3 = vector.shape_cast %2 : vector<1x8x128xf32> to vector<8x128xf32>
    %c2 = arith.constant 2 : index
    %c0_4 = arith.constant 0 : index
    %c0_5 = arith.constant 0 : index
    %4 = vector.load %arg1[%c2, %c0_4, %c0_5] : memref<37x8x128xf32, #tpu.memory_space<vmem>>, vector<1x8x128xf32>
    %5 = vector.shape_cast %4 : vector<1x8x128xf32> to vector<8x128xf32>
    %c3 = arith.constant 3 : index
    %c0_6 = arith.constant 0 : index
    %c0_7 = arith.constant 0 : index
    %6 = vector.load %arg1[%c3, %c0_6, %c0_7] : memref<37x8x128xf32, #tpu.memory_space<vmem>>, vector<1x8x128xf32>
    %7 = vector.shape_cast %6 : vector<1x8x128xf32> to vector<8x128xf32>
    %c4 = arith.constant 4 : index
    %c0_8 = arith.constant 0 : index
    %c0_9 = arith.constant 0 : index
    %8 = vector.load %arg1[%c4, %c0_8, %c0_9] : memref<37x8x128xf32, #tpu.memory_space<vmem>>, vector<1x8x128xf32>
    %9 = vector.shape_cast %8 : vector<1x8x128xf32> to vector<8x128xf32>
    %10 = arith.addf %1, %3 : vector<8x128xf32>
    %11 = arith.addf %10, %5 : vector<8x128xf32>
    %12 = arith.addf %11, %7 : vector<8x128xf32>
    %13 = arith.addf %12, %9 : vector<8x128xf32>
    %c0_i32 = arith.constant 0 : i32
    %c4_i32 = arith.constant 4 : i32
    %14 = arith.addi %c0_i32, %c4_i32 : i32
    %c1_i32 = arith.constant 1 : i32
    %15:6 = scf.for %arg3 = %c0_i32 to %14 step %c1_i32 iter_args(%arg4 = %13, %arg5 = %1, %arg6 = %3, %arg7 = %5, %arg8 = %7, %arg9 = %9) -> (vector<8x128xf32>, vector<8x128xf32>, vector<8x128xf32>, vector<8x128xf32>, vector<8x128xf32>, vector<8x128xf32>)  : i32 {
      %c8_i32 = arith.constant 8 : i32
      %18 = arith.muli %arg3, %c8_i32 : i32
      %19 = tpu.assume_multiple %18, 8 : i32
      %c5_i32 = arith.constant 5 : i32
      %20 = arith.addi %19, %c5_i32 : i32
      %21 = arith.index_cast %20 : i32 to index
      %c0_13 = arith.constant 0 : index
      %c0_14 = arith.constant 0 : index
      %22 = vector.load %arg1[%21, %c0_13, %c0_14] : memref<37x8x128xf32, #tpu.memory_space<vmem>>, vector<8x8x128xf32>
      %cst_15 = arith.constant 1.400000e+00 : f32
      %23 = vector.broadcast %cst_15 : f32 to vector<8x128xf32>
      %24 = arith.subf %arg4, %23 : vector<8x128xf32>
      %25 = math.absf %24 : vector<8x128xf32>
      %26 = math.absf %arg4 : vector<8x128xf32>
      %cst_16 = arith.constant 0.995199978 : f32
      %27 = vector.broadcast %cst_16 : f32 to vector<8x128xf32>
      %28 = arith.mulf %26, %27 : vector<8x128xf32>
      %29 = arith.cmpf ole, %25, %28 : vector<8x128xf32>
      %30 = arith.extui %29 : vector<8x128xi1> to vector<8x128xi32>
      %31 = arith.sitofp %30 : vector<8x128xi32> to vector<8x128xf32>
      %32 = vector.extract_strided_slice %22 {offsets = [0, 0, 0], sizes = [1, 8, 128], strides = [1, 1, 1]} : vector<8x8x128xf32> to vector<1x8x128xf32>
      %33 = vector.shape_cast %32 : vector<1x8x128xf32> to vector<8x128xf32>
      %34 = arith.subf %arg4, %arg5 : vector<8x128xf32>
      %35 = arith.addf %34, %33 : vector<8x128xf32>
      %cst_17 = arith.constant 1.400000e+00 : f32
      %36 = vector.broadcast %cst_17 : f32 to vector<8x128xf32>
      %37 = arith.mulf %31, %36 : vector<8x128xf32>
      %38 = arith.subf %35, %37 : vector<8x128xf32>
      %cst_18 = arith.constant 1.000000e-01 : f32
      %39 = vector.broadcast %cst_18 : f32 to vector<8x128xf32>
      %40 = arith.mulf %39, %31 : vector<8x128xf32>
      %41 = arith.subf %arg6, %40 : vector<8x128xf32>
      %cst_19 = arith.constant 3.000000e-01 : f32
      %42 = vector.broadcast %cst_19 : f32 to vector<8x128xf32>
      %43 = arith.mulf %42, %31 : vector<8x128xf32>
      %44 = arith.subf %arg7, %43 : vector<8x128xf32>
      %cst_20 = arith.constant 6.000000e-01 : f32
      %45 = vector.broadcast %cst_20 : f32 to vector<8x128xf32>
      %46 = arith.mulf %45, %31 : vector<8x128xf32>
      %47 = arith.subf %arg8, %46 : vector<8x128xf32>
      %cst_21 = arith.constant 3.000000e-01 : f32
      %48 = vector.broadcast %cst_21 : f32 to vector<8x128xf32>
      %49 = arith.mulf %48, %31 : vector<8x128xf32>
      %50 = arith.subf %arg9, %49 : vector<8x128xf32>
      %cst_22 = arith.constant 1.000000e-01 : f32
      %51 = vector.broadcast %cst_22 : f32 to vector<8x128xf32>
      %52 = arith.mulf %51, %31 : vector<8x128xf32>
      %53 = arith.subf %33, %52 : vector<8x128xf32>
      %cst_23 = arith.constant 1.400000e+00 : f32
      %54 = vector.broadcast %cst_23 : f32 to vector<8x128xf32>
      %55 = arith.subf %38, %54 : vector<8x128xf32>
      %56 = math.absf %55 : vector<8x128xf32>
      %57 = math.absf %38 : vector<8x128xf32>
      %cst_24 = arith.constant 0.995199978 : f32
      %58 = vector.broadcast %cst_24 : f32 to vector<8x128xf32>
      %59 = arith.mulf %57, %58 : vector<8x128xf32>
      %60 = arith.cmpf ole, %56, %59 : vector<8x128xf32>
      %61 = arith.extui %60 : vector<8x128xi1> to vector<8x128xi32>
      %62 = arith.sitofp %61 : vector<8x128xi32> to vector<8x128xf32>
      %63 = vector.extract_strided_slice %22 {offsets = [1, 0, 0], sizes = [1, 8, 128], strides = [1, 1, 1]} : vector<8x8x128xf32> to vector<1x8x128xf32>
      %64 = vector.shape_cast %63 : vector<1x8x128xf32> to vector<8x128xf32>
      %65 = arith.subf %38, %41 : vector<8x128xf32>
      %66 = arith.addf %65, %64 : vector<8x128xf32>
      %cst_25 = arith.constant 1.400000e+00 : f32
      %67 = vector.broadcast %cst_25 : f32 to vector<8x128xf32>
      %68 = arith.mulf %62, %67 : vector<8x128xf32>
      %69 = arith.subf %66, %68 : vector<8x128xf32>
      %cst_26 = arith.constant 1.000000e-01 : f32
      %70 = vector.broadcast %cst_26 : f32 to vector<8x128xf32>
      %71 = arith.mulf %70, %62 : vector<8x128xf32>
      %72 = arith.subf %44, %71 : vector<8x128xf32>
      %cst_27 = arith.constant 3.000000e-01 : f32
      %73 = vector.broadcast %cst_27 : f32 to vector<8x128xf32>
      %74 = arith.mulf %73, %62 : vector<8x128xf32>
      %75 = arith.subf %47, %74 : vector<8x128xf32>
      %cst_28 = arith.constant 6.000000e-01 : f32
      %76 = vector.broadcast %cst_28 : f32 to vector<8x128xf32>
      %77 = arith.mulf %76, %62 : vector<8x128xf32>
      %78 = arith.subf %50, %77 : vector<8x128xf32>
      %cst_29 = arith.constant 3.000000e-01 : f32
      %79 = vector.broadcast %cst_29 : f32 to vector<8x128xf32>
      %80 = arith.mulf %79, %62 : vector<8x128xf32>
      %81 = arith.subf %53, %80 : vector<8x128xf32>
      %cst_30 = arith.constant 1.000000e-01 : f32
      %82 = vector.broadcast %cst_30 : f32 to vector<8x128xf32>
      %83 = arith.mulf %82, %62 : vector<8x128xf32>
      %84 = arith.subf %64, %83 : vector<8x128xf32>
      %cst_31 = arith.constant 1.400000e+00 : f32
      %85 = vector.broadcast %cst_31 : f32 to vector<8x128xf32>
      %86 = arith.subf %69, %85 : vector<8x128xf32>
      %87 = math.absf %86 : vector<8x128xf32>
      %88 = math.absf %69 : vector<8x128xf32>
      %cst_32 = arith.constant 0.995199978 : f32
      %89 = vector.broadcast %cst_32 : f32 to vector<8x128xf32>
      %90 = arith.mulf %88, %89 : vector<8x128xf32>
      %91 = arith.cmpf ole, %87, %90 : vector<8x128xf32>
      %92 = arith.extui %91 : vector<8x128xi1> to vector<8x128xi32>
      %93 = arith.sitofp %92 : vector<8x128xi32> to vector<8x128xf32>
      %94 = vector.extract_strided_slice %22 {offsets = [2, 0, 0], sizes = [1, 8, 128], strides = [1, 1, 1]} : vector<8x8x128xf32> to vector<1x8x128xf32>
      %95 = vector.shape_cast %94 : vector<1x8x128xf32> to vector<8x128xf32>
      %96 = arith.subf %69, %72 : vector<8x128xf32>
      %97 = arith.addf %96, %95 : vector<8x128xf32>
      %cst_33 = arith.constant 1.400000e+00 : f32
      %98 = vector.broadcast %cst_33 : f32 to vector<8x128xf32>
      %99 = arith.mulf %93, %98 : vector<8x128xf32>
      %100 = arith.subf %97, %99 : vector<8x128xf32>
      %cst_34 = arith.constant 1.000000e-01 : f32
      %101 = vector.broadcast %cst_34 : f32 to vector<8x128xf32>
      %102 = arith.mulf %101, %93 : vector<8x128xf32>
      %103 = arith.subf %75, %102 : vector<8x128xf32>
      %cst_35 = arith.constant 3.000000e-01 : f32
      %104 = vector.broadcast %cst_35 : f32 to vector<8x128xf32>
      %105 = arith.mulf %104, %93 : vector<8x128xf32>
      %106 = arith.subf %78, %105 : vector<8x128xf32>
      %cst_36 = arith.constant 6.000000e-01 : f32
      %107 = vector.broadcast %cst_36 : f32 to vector<8x128xf32>
      %108 = arith.mulf %107, %93 : vector<8x128xf32>
      %109 = arith.subf %81, %108 : vector<8x128xf32>
      %cst_37 = arith.constant 3.000000e-01 : f32
      %110 = vector.broadcast %cst_37 : f32 to vector<8x128xf32>
      %111 = arith.mulf %110, %93 : vector<8x128xf32>
      %112 = arith.subf %84, %111 : vector<8x128xf32>
      %cst_38 = arith.constant 1.000000e-01 : f32
      %113 = vector.broadcast %cst_38 : f32 to vector<8x128xf32>
      %114 = arith.mulf %113, %93 : vector<8x128xf32>
      %115 = arith.subf %95, %114 : vector<8x128xf32>
      %cst_39 = arith.constant 1.400000e+00 : f32
      %116 = vector.broadcast %cst_39 : f32 to vector<8x128xf32>
      %117 = arith.subf %100, %116 : vector<8x128xf32>
      %118 = math.absf %117 : vector<8x128xf32>
      %119 = math.absf %100 : vector<8x128xf32>
      %cst_40 = arith.constant 0.995199978 : f32
      %120 = vector.broadcast %cst_40 : f32 to vector<8x128xf32>
      %121 = arith.mulf %119, %120 : vector<8x128xf32>
      %122 = arith.cmpf ole, %118, %121 : vector<8x128xf32>
      %123 = arith.extui %122 : vector<8x128xi1> to vector<8x128xi32>
      %124 = arith.sitofp %123 : vector<8x128xi32> to vector<8x128xf32>
      %125 = vector.extract_strided_slice %22 {offsets = [3, 0, 0], sizes = [1, 8, 128], strides = [1, 1, 1]} : vector<8x8x128xf32> to vector<1x8x128xf32>
      %126 = vector.shape_cast %125 : vector<1x8x128xf32> to vector<8x128xf32>
      %127 = arith.subf %100, %103 : vector<8x128xf32>
      %128 = arith.addf %127, %126 : vector<8x128xf32>
      %cst_41 = arith.constant 1.400000e+00 : f32
      %129 = vector.broadcast %cst_41 : f32 to vector<8x128xf32>
      %130 = arith.mulf %124, %129 : vector<8x128xf32>
      %131 = arith.subf %128, %130 : vector<8x128xf32>
      %cst_42 = arith.constant 1.000000e-01 : f32
      %132 = vector.broadcast %cst_42 : f32 to vector<8x128xf32>
      %133 = arith.mulf %132, %124 : vector<8x128xf32>
      %134 = arith.subf %106, %133 : vector<8x128xf32>
      %cst_43 = arith.constant 3.000000e-01 : f32
      %135 = vector.broadcast %cst_43 : f32 to vector<8x128xf32>
      %136 = arith.mulf %135, %124 : vector<8x128xf32>
      %137 = arith.subf %109, %136 : vector<8x128xf32>
      %cst_44 = arith.constant 6.000000e-01 : f32
      %138 = vector.broadcast %cst_44 : f32 to vector<8x128xf32>
      %139 = arith.mulf %138, %124 : vector<8x128xf32>
      %140 = arith.subf %112, %139 : vector<8x128xf32>
      %cst_45 = arith.constant 3.000000e-01 : f32
      %141 = vector.broadcast %cst_45 : f32 to vector<8x128xf32>
      %142 = arith.mulf %141, %124 : vector<8x128xf32>
      %143 = arith.subf %115, %142 : vector<8x128xf32>
      %cst_46 = arith.constant 1.000000e-01 : f32
      %144 = vector.broadcast %cst_46 : f32 to vector<8x128xf32>
      %145 = arith.mulf %144, %124 : vector<8x128xf32>
      %146 = arith.subf %126, %145 : vector<8x128xf32>
      %cst_47 = arith.constant 1.400000e+00 : f32
      %147 = vector.broadcast %cst_47 : f32 to vector<8x128xf32>
      %148 = arith.subf %131, %147 : vector<8x128xf32>
      %149 = math.absf %148 : vector<8x128xf32>
      %150 = math.absf %131 : vector<8x128xf32>
      %cst_48 = arith.constant 0.995199978 : f32
      %151 = vector.broadcast %cst_48 : f32 to vector<8x128xf32>
      %152 = arith.mulf %150, %151 : vector<8x128xf32>
      %153 = arith.cmpf ole, %149, %152 : vector<8x128xf32>
      %154 = arith.extui %153 : vector<8x128xi1> to vector<8x128xi32>
      %155 = arith.sitofp %154 : vector<8x128xi32> to vector<8x128xf32>
      %156 = vector.extract_strided_slice %22 {offsets = [4, 0, 0], sizes = [1, 8, 128], strides = [1, 1, 1]} : vector<8x8x128xf32> to vector<1x8x128xf32>
      %157 = vector.shape_cast %156 : vector<1x8x128xf32> to vector<8x128xf32>
      %158 = arith.subf %131, %134 : vector<8x128xf32>
      %159 = arith.addf %158, %157 : vector<8x128xf32>
      %cst_49 = arith.constant 1.400000e+00 : f32
      %160 = vector.broadcast %cst_49 : f32 to vector<8x128xf32>
      %161 = arith.mulf %155, %160 : vector<8x128xf32>
      %162 = arith.subf %159, %161 : vector<8x128xf32>
      %cst_50 = arith.constant 1.000000e-01 : f32
      %163 = vector.broadcast %cst_50 : f32 to vector<8x128xf32>
      %164 = arith.mulf %163, %155 : vector<8x128xf32>
      %165 = arith.subf %137, %164 : vector<8x128xf32>
      %cst_51 = arith.constant 3.000000e-01 : f32
      %166 = vector.broadcast %cst_51 : f32 to vector<8x128xf32>
      %167 = arith.mulf %166, %155 : vector<8x128xf32>
      %168 = arith.subf %140, %167 : vector<8x128xf32>
      %cst_52 = arith.constant 6.000000e-01 : f32
      %169 = vector.broadcast %cst_52 : f32 to vector<8x128xf32>
      %170 = arith.mulf %169, %155 : vector<8x128xf32>
      %171 = arith.subf %143, %170 : vector<8x128xf32>
      %cst_53 = arith.constant 3.000000e-01 : f32
      %172 = vector.broadcast %cst_53 : f32 to vector<8x128xf32>
      %173 = arith.mulf %172, %155 : vector<8x128xf32>
      %174 = arith.subf %146, %173 : vector<8x128xf32>
      %cst_54 = arith.constant 1.000000e-01 : f32
      %175 = vector.broadcast %cst_54 : f32 to vector<8x128xf32>
      %176 = arith.mulf %175, %155 : vector<8x128xf32>
      %177 = arith.subf %157, %176 : vector<8x128xf32>
      %cst_55 = arith.constant 1.400000e+00 : f32
      %178 = vector.broadcast %cst_55 : f32 to vector<8x128xf32>
      %179 = arith.subf %162, %178 : vector<8x128xf32>
      %180 = math.absf %179 : vector<8x128xf32>
      %181 = math.absf %162 : vector<8x128xf32>
      %cst_56 = arith.constant 0.995199978 : f32
      %182 = vector.broadcast %cst_56 : f32 to vector<8x128xf32>
      %183 = arith.mulf %181, %182 : vector<8x128xf32>
      %184 = arith.cmpf ole, %180, %183 : vector<8x128xf32>
      %185 = arith.extui %184 : vector<8x128xi1> to vector<8x128xi32>
      %186 = arith.sitofp %185 : vector<8x128xi32> to vector<8x128xf32>
      %187 = vector.extract_strided_slice %22 {offsets = [5, 0, 0], sizes = [1, 8, 128], strides = [1, 1, 1]} : vector<8x8x128xf32> to vector<1x8x128xf32>
      %188 = vector.shape_cast %187 : vector<1x8x128xf32> to vector<8x128xf32>
      %189 = arith.subf %162, %165 : vector<8x128xf32>
      %190 = arith.addf %189, %188 : vector<8x128xf32>
      %cst_57 = arith.constant 1.400000e+00 : f32
      %191 = vector.broadcast %cst_57 : f32 to vector<8x128xf32>
      %192 = arith.mulf %186, %191 : vector<8x128xf32>
      %193 = arith.subf %190, %192 : vector<8x128xf32>
      %cst_58 = arith.constant 1.000000e-01 : f32
      %194 = vector.broadcast %cst_58 : f32 to vector<8x128xf32>
      %195 = arith.mulf %194, %186 : vector<8x128xf32>
      %196 = arith.subf %168, %195 : vector<8x128xf32>
      %cst_59 = arith.constant 3.000000e-01 : f32
      %197 = vector.broadcast %cst_59 : f32 to vector<8x128xf32>
      %198 = arith.mulf %197, %186 : vector<8x128xf32>
      %199 = arith.subf %171, %198 : vector<8x128xf32>
      %cst_60 = arith.constant 6.000000e-01 : f32
      %200 = vector.broadcast %cst_60 : f32 to vector<8x128xf32>
      %201 = arith.mulf %200, %186 : vector<8x128xf32>
      %202 = arith.subf %174, %201 : vector<8x128xf32>
      %cst_61 = arith.constant 3.000000e-01 : f32
      %203 = vector.broadcast %cst_61 : f32 to vector<8x128xf32>
      %204 = arith.mulf %203, %186 : vector<8x128xf32>
      %205 = arith.subf %177, %204 : vector<8x128xf32>
      %cst_62 = arith.constant 1.000000e-01 : f32
      %206 = vector.broadcast %cst_62 : f32 to vector<8x128xf32>
      %207 = arith.mulf %206, %186 : vector<8x128xf32>
      %208 = arith.subf %188, %207 : vector<8x128xf32>
      %cst_63 = arith.constant 1.400000e+00 : f32
      %209 = vector.broadcast %cst_63 : f32 to vector<8x128xf32>
      %210 = arith.subf %193, %209 : vector<8x128xf32>
      %211 = math.absf %210 : vector<8x128xf32>
      %212 = math.absf %193 : vector<8x128xf32>
      %cst_64 = arith.constant 0.995199978 : f32
      %213 = vector.broadcast %cst_64 : f32 to vector<8x128xf32>
      %214 = arith.mulf %212, %213 : vector<8x128xf32>
      %215 = arith.cmpf ole, %211, %214 : vector<8x128xf32>
      %216 = arith.extui %215 : vector<8x128xi1> to vector<8x128xi32>
      %217 = arith.sitofp %216 : vector<8x128xi32> to vector<8x128xf32>
      %218 = vector.extract_strided_slice %22 {offsets = [6, 0, 0], sizes = [1, 8, 128], strides = [1, 1, 1]} : vector<8x8x128xf32> to vector<1x8x128xf32>
      %219 = vector.shape_cast %218 : vector<1x8x128xf32> to vector<8x128xf32>
      %220 = arith.subf %193, %196 : vector<8x128xf32>
      %221 = arith.addf %220, %219 : vector<8x128xf32>
      %cst_65 = arith.constant 1.400000e+00 : f32
      %222 = vector.broadcast %cst_65 : f32 to vector<8x128xf32>
      %223 = arith.mulf %217, %222 : vector<8x128xf32>
      %224 = arith.subf %221, %223 : vector<8x128xf32>
      %cst_66 = arith.constant 1.000000e-01 : f32
      %225 = vector.broadcast %cst_66 : f32 to vector<8x128xf32>
      %226 = arith.mulf %225, %217 : vector<8x128xf32>
      %227 = arith.subf %199, %226 : vector<8x128xf32>
      %cst_67 = arith.constant 3.000000e-01 : f32
      %228 = vector.broadcast %cst_67 : f32 to vector<8x128xf32>
      %229 = arith.mulf %228, %217 : vector<8x128xf32>
      %230 = arith.subf %202, %229 : vector<8x128xf32>
      %cst_68 = arith.constant 6.000000e-01 : f32
      %231 = vector.broadcast %cst_68 : f32 to vector<8x128xf32>
      %232 = arith.mulf %231, %217 : vector<8x128xf32>
      %233 = arith.subf %205, %232 : vector<8x128xf32>
      %cst_69 = arith.constant 3.000000e-01 : f32
      %234 = vector.broadcast %cst_69 : f32 to vector<8x128xf32>
      %235 = arith.mulf %234, %217 : vector<8x128xf32>
      %236 = arith.subf %208, %235 : vector<8x128xf32>
      %cst_70 = arith.constant 1.000000e-01 : f32
      %237 = vector.broadcast %cst_70 : f32 to vector<8x128xf32>
      %238 = arith.mulf %237, %217 : vector<8x128xf32>
      %239 = arith.subf %219, %238 : vector<8x128xf32>
      %cst_71 = arith.constant 1.400000e+00 : f32
      %240 = vector.broadcast %cst_71 : f32 to vector<8x128xf32>
      %241 = arith.subf %224, %240 : vector<8x128xf32>
      %242 = math.absf %241 : vector<8x128xf32>
      %243 = math.absf %224 : vector<8x128xf32>
      %cst_72 = arith.constant 0.995199978 : f32
      %244 = vector.broadcast %cst_72 : f32 to vector<8x128xf32>
      %245 = arith.mulf %243, %244 : vector<8x128xf32>
      %246 = arith.cmpf ole, %242, %245 : vector<8x128xf32>
      %247 = arith.extui %246 : vector<8x128xi1> to vector<8x128xi32>
      %248 = arith.sitofp %247 : vector<8x128xi32> to vector<8x128xf32>
      %249 = vector.extract_strided_slice %22 {offsets = [7, 0, 0], sizes = [1, 8, 128], strides = [1, 1, 1]} : vector<8x8x128xf32> to vector<1x8x128xf32>
      %250 = vector.shape_cast %249 : vector<1x8x128xf32> to vector<8x128xf32>
      %251 = arith.subf %224, %227 : vector<8x128xf32>
      %252 = arith.addf %251, %250 : vector<8x128xf32>
      %cst_73 = arith.constant 1.400000e+00 : f32
      %253 = vector.broadcast %cst_73 : f32 to vector<8x128xf32>
      %254 = arith.mulf %248, %253 : vector<8x128xf32>
      %255 = arith.subf %252, %254 : vector<8x128xf32>
      %cst_74 = arith.constant 1.000000e-01 : f32
      %256 = vector.broadcast %cst_74 : f32 to vector<8x128xf32>
      %257 = arith.mulf %256, %248 : vector<8x128xf32>
      %258 = arith.subf %230, %257 : vector<8x128xf32>
      %cst_75 = arith.constant 3.000000e-01 : f32
      %259 = vector.broadcast %cst_75 : f32 to vector<8x128xf32>
      %260 = arith.mulf %259, %248 : vector<8x128xf32>
      %261 = arith.subf %233, %260 : vector<8x128xf32>
      %cst_76 = arith.constant 6.000000e-01 : f32
      %262 = vector.broadcast %cst_76 : f32 to vector<8x128xf32>
      %263 = arith.mulf %262, %248 : vector<8x128xf32>
      %264 = arith.subf %236, %263 : vector<8x128xf32>
      %cst_77 = arith.constant 3.000000e-01 : f32
      %265 = vector.broadcast %cst_77 : f32 to vector<8x128xf32>
      %266 = arith.mulf %265, %248 : vector<8x128xf32>
      %267 = arith.subf %239, %266 : vector<8x128xf32>
      %cst_78 = arith.constant 1.000000e-01 : f32
      %268 = vector.broadcast %cst_78 : f32 to vector<8x128xf32>
      %269 = arith.mulf %268, %248 : vector<8x128xf32>
      %270 = arith.subf %250, %269 : vector<8x128xf32>
      %271 = vector.shape_cast %31 : vector<8x128xf32> to vector<1x8x128xf32>
      %272 = vector.shape_cast %62 : vector<8x128xf32> to vector<1x8x128xf32>
      %273 = vector.shape_cast %93 : vector<8x128xf32> to vector<1x8x128xf32>
      %274 = vector.shape_cast %124 : vector<8x128xf32> to vector<1x8x128xf32>
      %275 = vector.shape_cast %155 : vector<8x128xf32> to vector<1x8x128xf32>
      %276 = vector.shape_cast %186 : vector<8x128xf32> to vector<1x8x128xf32>
      %277 = vector.shape_cast %217 : vector<8x128xf32> to vector<1x8x128xf32>
      %278 = vector.shape_cast %248 : vector<8x128xf32> to vector<1x8x128xf32>
      %279 = tpu.concatenate %271, %272, %273, %274, %275, %276, %277, %278 in 0 : vector<1x8x128xf32>, vector<1x8x128xf32>, vector<1x8x128xf32>, vector<1x8x128xf32>, vector<1x8x128xf32>, vector<1x8x128xf32>, vector<1x8x128xf32>, vector<1x8x128xf32> -> vector<8x8x128xf32>
      %280 = arith.index_cast %19 : i32 to index
      %c0_79 = arith.constant 0 : index
      %c0_80 = arith.constant 0 : index
      %281 = vector.load %arg2[%280, %c0_79, %c0_80] : memref<37x8x128xf32, #tpu.memory_space<vmem>>, vector<8x8x128xf32>
      tpu.vector_store %arg2[%280, %c0_79, %c0_80], %279 {strides = array<i32>} : memref<37x8x128xf32, #tpu.memory_space<vmem>>, vector<8x8x128xf32>,
      scf.yield %255, %258, %261, %264, %267, %270 : vector<8x128xf32>, vector<8x128xf32>, vector<8x128xf32>, vector<8x128xf32>, vector<8x128xf32>, vector<8x128xf32>
    }
    %c4_i32_10 = arith.constant 4 : i32
    %cst = arith.constant 0.000000e+00 : f32
    %16 = vector.broadcast %cst : f32 to vector<10x8x128xf32>
    %c27 = arith.constant 27 : index
    %c0_11 = arith.constant 0 : index
    %c0_12 = arith.constant 0 : index
    %17 = vector.load %arg2[%c27, %c0_11, %c0_12] : memref<37x8x128xf32, #tpu.memory_space<vmem>>, vector<10x8x128xf32>
    tpu.vector_store %arg2[%c27, %c0_11, %c0_12], %16 {strides = array<i32>} : memref<37x8x128xf32, #tpu.memory_space<vmem>>, vector<10x8x128xf32>,
    return
  }
  func.func @transform_0(%arg0: i32) -> (i32, i32, i32) {
    %c0_i32 = arith.constant 0 : i32
    %c0_i32_0 = arith.constant 0 : i32
    %c0_i32_1 = arith.constant 0 : i32
    return %c0_i32, %arg0, %c0_i32_0 : i32, i32, i32
  }
  func.func @transform_1(%arg0: i32) -> (i32, i32, i32) {
    %c0_i32 = arith.constant 0 : i32
    %c0_i32_0 = arith.constant 0 : i32
    %c0_i32_1 = arith.constant 0 : i32
    return %c0_i32, %arg0, %c0_i32_0 : i32, i32, i32
  }
}

</mosaic_0001>

<bundles_post_ra>
// kernel: tpu_custom_call.1
= control target key start
LH: loop header
LB: loop body
LE: loop exit
PB: predicated region body
PF: predicated region fallthrough
CT: control target
= control target key end

     0   :  { %6 = vsyncpa [#allocation3], 0  ;;  %s586_s0 = inlined_call_operand.hbm [shape: f32[37,8,128], index: 0, kind: input, shape index: {}]   ;;  %s587_s1 = inlined_call_operand.hbm [shape: f32[37,8,128], index: 1, kind: output, shape index: {}]  }
   0x1   :  { %7 = vsyncpa [#allocation4], 0  ;;  %s471_s6 = smov [#allocation2]  }
   0x2   :  { %s13_s7 = sshll.u32 %s471_s6, 4  ;;  %s14_s7 = int_to_ptr.vmem [resolvable:$true] %s13_s7 }
   0x3   :  { %s379_s8 = scalar_lea.vmem %s14_s7, 4736  ;;  %p384_p1 = scmp.lt.s32.totalorder %s14_s7, %s14_s7 }
   0x4   :  { %p380_p0 = scmp.ne.s32.totalorder %s14_s7, %s379_s8  ;;  %p385_p2 = scmp.lt.s32.totalorder %s379_s8, %s379_s8 }
   0x6   :  { %p386_p3 = por %p385_p2, %p384_p1 }
   0x8   :  { %p387_p4 = pnand %p386_p3, %p380_p0 }
   0xa   :  { %390 = shalt.err (!%p387_p4)
}
   0xb   :  { %s472_s9 = smov 128   ;;  %s473_s10 = smov 8  }
   0xc   :  { %19 = dma.hbm_to_vmem [thread:$0]  %s586_s0, 4736, %s14_s7, [#allocation3], %s472_s9, %s472_s9, %s473_s10  }
   0xd   :  { %439 = dma.done.wait [#allocation3], 4736  }
   0xe   :  { %440 = vsyncadd [#allocation3], 4294962560  ;;  %v23_v0 = vld [vmem:[#allocation2] sm:$0xff]   ;;  %v25_v1 = vld [vmem:[#allocation2 + $0x8] sm:$0xff]   ;;  %s505_s0 = smov 0  }
   0xf   :  { %v27_v2 = vld [vmem:[#allocation2 + $0x10] sm:$0xff]   ;;  %v32_v3 = vadd.f32 %v25_v1, %v23_v0  ;;  %v29_v4 = vld [vmem:[#allocation2 + $0x18] sm:$0xff]   ;;  %v31_v6 = vld [vmem:[#allocation2 + $0x20] sm:$0xff]  }
  0x11   :  { %v33_v5 = vadd.f32 %v32_v3, %v27_v2 }
  0x13   :  { %v34_v7 = vadd.f32 %v33_v5, %v29_v4 }
  0x15   :  { %v35_v8 = vadd.f32 %v34_v7, %v31_v6  }
  0x16 LB: > { %s307_s13 = sshll.u32 %s469_s0, 6  ;;  %v290_v9 = vadd.f32 -1.4, %v465_v8  ;;  %v62_v10 = vand.u32 2147483647, %v465_v8  ;;  %v67_v11 = vsub.f32 %v465_v8, %v461_v0  ;;  %v474_v15 = vmov 0.0   ;;  %s469_s0 = sphi %s505_s0, %s41_s0   ;;  %v465_v8 = vphi %v35_v8, %v588_v8   ;;  %v461_v0 = vphi %v23_v0, %v205_v0   ;;  %v457_v1 = vphi %v25_v1, %v207_v1   ;;  %v453_v2 = vphi %v27_v2, %v209_v2   ;;  %v449_v4 = vphi %v29_v4, %v210_v4   ;;  %v445_v6 = vphi %v31_v6, %v211_v6  }
  0x17   : > { %s517_s14 = scalar_lea.vmem [#allocation2], %s307_s13  ;;  %s524_s15 = scalar_lea.vmem [#allocation5], %s307_s13 }
  0x18   : > { %v520_v12 = vld [vmem:[%s517_s14 + $0x28] sm:$0xff]  ;;  %v61_v13 = vand.u32 2147483647, %v290_v9  ;;  %v63_v14 = vmul.f32 0.9952, %v62_v10  ;;  %v528_v26 = vld [vmem:[%s517_s14 + $0x30] sm:$0xff] }
  0x19   : > { %v68_v17 = vadd.f32 %v520_v12, %v67_v11  ;;  %v534_v42 = vld [vmem:[%s517_s14 + $0x38] sm:$0xff]  ;;  %v543_v59 = vld [vmem:[%s517_s14 + $0x40] sm:$0xff]  ;;  %s41_s0 = sadd.s32 1, %s469_s0  }
  0x1a   : > { %vm64_vm0 = vcmp.le.f32.partialorder %v61_v13, %v63_v14  ;;  %v286_v13 = vld [vmem:[%s517_s14 + $0x48] sm:$0xff]  ;;  %p38_p5 = scmp.ge.s32.totalorder %s41_s0, 4  }
  0x1b   : > { %v291_v16 = vsel %vm64_vm0, 1.0, %v474_v15  ;;  %s476_s16 = smov (%p38_p5), [#allocation5]  }
  0x1c   : > { %v69_v18 = vmul.f32 1.4, %v291_v16  ;;  %v71_v19 = vmul.f32 0.1, %v291_v16  ;;  %214 = vst [vmem:[%s524_s15] sm:$0xff] %v291_v16  ;;  %v73_v22 = vmul.f32 0.3, %v291_v16 }
  0x1d   : > { %v75_v34 = vmul.f32 0.6, %v291_v16  ;;  %s238_s17 = sshll.u32 (%p38_p5), %s476_s16, 4  ;;  %s239_s17 = int_to_ptr.vmem [resolvable:$true] %s238_s17 }
  0x1e   : > { %v72_v20 = vsub.f32 %v457_v1, %v71_v19  ;;  %v70_v21 = vsub.f32 %v68_v17, %v69_v18  ;;  %v74_v29 = vsub.f32 %v453_v2, %v73_v22  ;;  %v77_v50 = vsub.f32 %v445_v6, %v73_v22  ;;  %s391_s18 = scalar_lea.vmem (%p38_p5), %s239_s17, 4736  ;;  %p396_p7 = scmp.lt.s32.totalorder (%p38_p5), %s239_s17, %s239_s17 }
  0x1f   : > { %v76_v37 = vsub.f32 %v449_v4, %v75_v34  ;;  %v78_v62 = vsub.f32 %v520_v12, %v71_v19  ;;  %p392_p6 = scmp.ne.s32.totalorder (%p38_p5), %s239_s17, %s391_s18  ;;  %p397_p8 = scmp.lt.s32.totalorder (%p38_p5), %s391_s18, %s391_s18 }
  0x20   : > { %v292_v23 = vadd.f32 -1.4, %v70_v21  ;;  %v81_v24 = vand.u32 2147483647, %v70_v21  ;;  %v86_v25 = vsub.f32 %v70_v21, %v72_v20 }
  0x21   :  { %p398_p9 = por (%p38_p5), %p397_p8, %p396_p7 }
  0x22   : > { %v80_v27 = vand.u32 2147483647, %v292_v23  ;;  %v82_v28 = vmul.f32 0.9952, %v81_v24  ;;  %v87_v31 = vadd.f32 %v528_v26, %v86_v25 }
  0x23   :  { %p399_p10 = pnand (%p38_p5), %p398_p9, %p392_p6 }
  0x24   : > { %vm83_vm1 = vcmp.le.f32.partialorder %v80_v27, %v82_v28 }
  0x25   : > { %v293_v30 = vsel %vm83_vm1, 1.0, %v474_v15 }
  0x26   : > { %v88_v32 = vmul.f32 1.4, %v293_v30  ;;  %v90_v33 = vmul.f32 0.1, %v293_v30  ;;  %215 = vst [vmem:[%s524_s15 + $0x8] sm:$0xff] %v293_v30 }
  0x27   : > { %v92_v38 = vmul.f32 0.3, %v293_v30  ;;  %v94_v51 = vmul.f32 0.6, %v293_v30 }
  0x28   : > { %v91_v35 = vsub.f32 %v74_v29, %v90_v33  ;;  %v89_v36 = vsub.f32 %v87_v31, %v88_v32  ;;  %v97_v17 = vsub.f32 %v528_v26, %v90_v33  ;;  %v287_v26 = vld [vmem:[%s517_s14 + $0x50] sm:$0xff] }
  0x29   : > { %v93_v45 = vsub.f32 %v76_v37, %v92_v38  ;;  %v95_v54 = vsub.f32 %v77_v50, %v94_v51  ;;  %v96_v4 = vsub.f32 %v78_v62, %v92_v38  ;;  %v288_v51 = vld [vmem:[%s517_s14 + $0x58] sm:$0xff] }
  0x2a   : > { %v294_v39 = vadd.f32 -1.4, %v89_v36  ;;  %v100_v40 = vand.u32 2147483647, %v89_v36  ;;  %v105_v41 = vsub.f32 %v89_v36, %v91_v35 }
  0x2c   : > { %v99_v43 = vand.u32 2147483647, %v294_v39  ;;  %v101_v44 = vmul.f32 0.9952, %v100_v40  ;;  %v106_v47 = vadd.f32 %v534_v42, %v105_v41 }
  0x2e   : > { %vm102_vm2 = vcmp.le.f32.partialorder %v99_v43, %v101_v44 }
  0x2f   : > { %v295_v46 = vsel %vm102_vm2, 1.0, %v474_v15 }
  0x30   : > { %v107_v48 = vmul.f32 1.4, %v295_v46  ;;  %v538_v49 = vmul.f32 0.1, %v295_v46  ;;  %216 = vst [vmem:[%s524_s15 + $0x10] sm:$0xff] %v295_v46 }
  0x31   : > { %v111_v55 = vmul.f32 0.3, %v295_v46  ;;  %v113_v5 = vmul.f32 0.6, %v295_v46 }
  0x32   : > { %v110_v52 = vsub.f32 %v93_v45, %v538_v49  ;;  %v108_v53 = vsub.f32 %v106_v47, %v107_v48  ;;  %v116_v35 = vsub.f32 %v534_v42, %v538_v49 }
  0x33   : > { %v112_v63 = vsub.f32 %v95_v54, %v111_v55  ;;  %v114_v8 = vsub.f32 %v96_v4, %v113_v5  ;;  %v115_v23 = vsub.f32 %v97_v17, %v111_v55 }
  0x34   : > { %v296_v56 = vadd.f32 -1.4, %v108_v53  ;;  %v119_v57 = vand.u32 2147483647, %v108_v53  ;;  %v124_v58 = vsub.f32 %v108_v53, %v110_v52 }
  0x36   : > { %v118_v60 = vand.u32 2147483647, %v296_v56  ;;  %v120_v61 = vmul.f32 0.9952, %v119_v57  ;;  %v125_v1 = vadd.f32 %v543_v59, %v124_v58 }
  0x38   : > { %vm121_vm3 = vcmp.le.f32.partialorder %v118_v60, %v120_v61 }
  0x39   : > { %v297_v0 = vsel %vm121_vm3, 1.0, %v474_v15 }
  0x3a   : > { %v126_v2 = vmul.f32 1.4, %v297_v0  ;;  %v128_v3 = vmul.f32 0.1, %v297_v0  ;;  %217 = vst [vmem:[%s524_s15 + $0x18] sm:$0xff] %v297_v0 }
  0x3b   : > { %v130_v9 = vmul.f32 0.3, %v297_v0  ;;  %v132_v24 = vmul.f32 0.6, %v297_v0 }
  0x3c   : > { %v129_v6 = vsub.f32 %v112_v63, %v128_v3  ;;  %v127_v7 = vsub.f32 %v125_v1, %v126_v2  ;;  %v135_v42 = vsub.f32 %v543_v59, %v128_v3 }
  0x3d   : > { %v131_v18 = vsub.f32 %v114_v8, %v130_v9  ;;  %v133_v28 = vsub.f32 %v115_v23, %v132_v24  ;;  %v134_v41 = vsub.f32 %v116_v35, %v130_v9  ;;  %v289_v8 = vld [vmem:[%s517_s14 + $0x60] sm:$0xff] }
  0x3e   : > { %v298_v10 = vadd.f32 -1.4, %v127_v7  ;;  %v138_v11 = vand.u32 2147483647, %v127_v7  ;;  %v143_v12 = vsub.f32 %v127_v7, %v129_v6 }
  0x40   : > { %v137_v14 = vand.u32 2147483647, %v298_v10  ;;  %v139_v16 = vmul.f32 0.9952, %v138_v11  ;;  %v144_v20 = vadd.f32 %v286_v13, %v143_v12 }
  0x42   : > { %vm140_vm4 = vcmp.le.f32.partialorder %v137_v14, %v139_v16 }
  0x43   : > { %v299_v19 = vsel %vm140_vm4, 1.0, %v474_v15 }
  0x44   : > { %v145_v21 = vmul.f32 1.4, %v299_v19  ;;  %v147_v22 = vmul.f32 0.1, %v299_v19  ;;  %218 = vst [vmem:[%s524_s15 + $0x20] sm:$0xff] %v299_v19 }
  0x45   : > { %v149_v29 = vmul.f32 0.3, %v299_v19  ;;  %v151_v43 = vmul.f32 0.6, %v299_v19 }
  0x46   : > { %v148_v25 = vsub.f32 %v131_v18, %v147_v22  ;;  %v146_v27 = vsub.f32 %v144_v20, %v145_v21  ;;  %v154_v58 = vsub.f32 %v286_v13, %v147_v22 }
  0x47   : > { %v150_v36 = vsub.f32 %v133_v28, %v149_v29  ;;  %v152_v46 = vsub.f32 %v134_v41, %v151_v43  ;;  %v153_v55 = vsub.f32 %v135_v42, %v149_v29 }
  0x48   : > { %v300_v30 = vadd.f32 -1.4, %v146_v27  ;;  %v157_v31 = vand.u32 2147483647, %v146_v27  ;;  %v162_v32 = vsub.f32 %v146_v27, %v148_v25 }
  0x4a   : > { %v156_v33 = vand.u32 2147483647, %v300_v30  ;;  %v158_v34 = vmul.f32 0.9952, %v157_v31  ;;  %v163_v38 = vadd.f32 %v287_v26, %v162_v32 }
  0x4c   : > { %vm159_vm5 = vcmp.le.f32.partialorder %v156_v33, %v158_v34 }
  0x4d   : > { %v301_v37 = vsel %vm159_vm5, 1.0, %v474_v15 }
  0x4e   : > { %v164_v39 = vmul.f32 1.4, %v301_v37  ;;  %v166_v40 = vmul.f32 0.1, %v301_v37  ;;  %219 = vst [vmem:[%s524_s15 + $0x28] sm:$0xff] %v301_v37 }
  0x4f   : > { %v168_v47 = vmul.f32 0.3, %v301_v37  ;;  %v170_v60 = vmul.f32 0.6, %v301_v37 }
  0x50   : > { %v167_v44 = vsub.f32 %v150_v36, %v166_v40  ;;  %v165_v45 = vsub.f32 %v163_v38, %v164_v39  ;;  %v173_v7 = vsub.f32 %v287_v26, %v166_v40 }
  0x51   : > { %v169_v54 = vsub.f32 %v152_v46, %v168_v47  ;;  %v171_v1 = vsub.f32 %v153_v55, %v170_v60  ;;  %v172_v59 = vsub.f32 %v154_v58, %v168_v47 }
  0x52   : > { %v302_v48 = vadd.f32 -1.4, %v165_v45  ;;  %v176_v50 = vand.u32 2147483647, %v165_v45  ;;  %v181_v49 = vsub.f32 %v165_v45, %v167_v44 }
  0x54   : > { %v175_v52 = vand.u32 2147483647, %v302_v48  ;;  %v177_v53 = vmul.f32 0.9952, %v176_v50  ;;  %v182_v57 = vadd.f32 %v288_v51, %v181_v49 }
  0x56   : > { %vm178_vm6 = vcmp.le.f32.partialorder %v175_v52, %v177_v53 }
  0x57   : > { %v303_v56 = vsel %vm178_vm6, 1.0, %v474_v15 }
  0x58   : > { %v183_v61 = vmul.f32 1.4, %v303_v56  ;;  %v185_v62 = vmul.f32 0.1, %v303_v56  ;;  %220 = vst [vmem:[%s524_s15 + $0x30] sm:$0xff] %v303_v56 }
  0x59   : > { %v187_v2 = vmul.f32 0.3, %v303_v56  ;;  %v189_v3 = vmul.f32 0.6, %v303_v56 }
  0x5a   : > { %v186_v63 = vsub.f32 %v169_v54, %v185_v62  ;;  %v184_v0 = vsub.f32 %v182_v57, %v183_v61  ;;  %v192_v13 = vsub.f32 %v288_v51, %v185_v62 }
  0x5b   : > { %v188_v11 = vsub.f32 %v171_v1, %v187_v2  ;;  %v190_v12 = vsub.f32 %v172_v59, %v189_v3  ;;  %v191_v16 = vsub.f32 %v173_v7, %v187_v2 }
  0x5c   : > { %v304_v4 = vadd.f32 -1.4, %v184_v0  ;;  %v195_v5 = vand.u32 2147483647, %v184_v0  ;;  %v200_v6 = vsub.f32 %v184_v0, %v186_v63 }
  0x5e   : > { %v194_v9 = vand.u32 2147483647, %v304_v4  ;;  %v196_v10 = vmul.f32 0.9952, %v195_v5  ;;  %v201_v14 = vadd.f32 %v289_v8, %v200_v6 }
  0x60   : > { %vm197_vm7 = vcmp.le.f32.partialorder %v194_v9, %v196_v10 }
  0x61   : > { %v305_v17 = vsel %vm197_vm7, 1.0, %v474_v15  ;;  %v475_v15 = vmov (%p38_p5), 0.0  }
  0x62   : > { %v202_v18 = vmul.f32 1.4, %v305_v17  ;;  %v204_v19 = vmul.f32 0.1, %v305_v17  ;;  %v206_v20 = vmul.f32 0.3, %v305_v17 }
  0x63   : > { %221 = vst [vmem:[%s524_s15 + $0x38] sm:$0xff] %v305_v17  ;;  %v208_v21 = vmul.f32 0.6, %v305_v17  ;;  %40 = sbr.rel (!%p38_p5) target bundleno = 22 (0x16), region = 42 }
  0x64   : > { %v203_v22 = vsub.f32 %v201_v14, %v202_v18   ;;  %v205_v0 = vsub.f32 %v188_v11, %v204_v19   ;;  %v207_v1 = vsub.f32 %v190_v12, %v206_v20   ;;  %v210_v4 = vsub.f32 %v192_v13, %v206_v20   ;;  %223 = vst [vmem:[#allocation5 + $0xd8] sm:$0xff] (%p38_p5), %v475_v15 }
  0x65   : > { %v209_v2 = vsub.f32 %v191_v16, %v208_v21   ;;  %v211_v6 = vsub.f32 %v289_v8, %v204_v19   ;;  %224 = vst [vmem:[#allocation5 + $0xe0] sm:$0xff] (%p38_p5), %v475_v15  ;;  %225 = vst [vmem:[#allocation5 + $0xe8] sm:$0xff] (%p38_p5), %v475_v15 }
  0x66   : > { %v588_v8 = vmov %v203_v22  ;;  %226 = vst [vmem:[#allocation5 + $0xf0] sm:$0xff] (%p38_p5), %v475_v15  ;;  %227 = vst [vmem:[#allocation5 + $0xf8] sm:$0xff] (%p38_p5), %v475_v15 }
  0x67   :  { %228 = vst [vmem:[#allocation5 + $0x100] sm:$0xff] (%p38_p5), %v475_v15  ;;  %229 = vst [vmem:[#allocation5 + $0x108] sm:$0xff] (%p38_p5), %v475_v15 }
  0x68   :  { %230 = vst [vmem:[#allocation5 + $0x110] sm:$0xff] %v475_v15  ;;  %231 = vst [vmem:[#allocation5 + $0x118] sm:$0xff] %v475_v15 }
  0x69   :  { %232 = vst [vmem:[#allocation5 + $0x120] sm:$0xff] %v475_v15 }
  0x6a   :  { %402 = shalt.err (!%p399_p10)
}
  0x6b   :  { %244 = dma.vmem_to_hbm [thread:$0]  %s239_s17, 4736, %s587_s1, [#allocation4], %s472_s9, %s472_s9, %s473_s10  }
  0x6c   :  { %441 = dma.done.wait [#allocation4], 4736  }
  0x6d   :  { %442 = vsyncadd [#allocation4], 4294962560 }
  0x6e   :  { %248 = vsyncpa [#allocation3], 1 }
  0x6f   :  { %249 = vsyncpa [#allocation4], 1 }

</bundles_post_ra>
